<compile_context>
chip_gen: v7x
topology: tpu7x:2x2x1
jax: 0.10.0
libtpu: 0.0.40
codegen_flags: <defaults>
</compile_context>

<pallas_src>
import functools

import jax
import jax.numpy as jnp
import numpy as np
from jax.experimental import pallas as pl
from jax.experimental.pallas import tpu as pltpu

EXPANSION = 4
BN_EPS = 1e-5


# ----------------------------- Pallas kernel ------------------------------

def _bottleneck_kernel(x_ref, w1_ref, b1_ref, w2_ref, b2_ref, mask_ref,
                       w3_ref, b3_ref, *rest, shifts, has_sel, has_proj):
    """Whole bottleneck, channel-major: activations are (C, M) with M on lanes."""
    refs = list(rest)
    out_ref = refs.pop()
    sel_ref = refs.pop(0) if has_sel else None
    ws_ref = refs.pop(0) if has_proj else None
    bs_ref = refs.pop(0) if has_proj else None

    planes = w1_ref.shape[0]
    x = x_ref[...]                                     # (Cin, M1)
    m1 = x.shape[1]

    # --- conv1 (1x1) + folded bn1 + relu: stays in vregs/VMEM ---
    h1 = jnp.dot(w1_ref[...], x, preferred_element_type=jnp.float32)   # (planes, M1)
    h1 = jnp.maximum(h1 + b1_ref[...], 0.0)

    # --- conv2 (3x3, pad=1) at stride 1: 9 accumulated matmuls over ---
    # --- lane-rolled copies of h1; static masks zero padded/wrapped lanes ---
    masks = mask_ref[...]                              # (9, M1)
    w2 = w2_ref[...]                                   # (9*planes, planes): (out,in) per tap
    acc = jnp.zeros((planes, m1), jnp.float32)
    for t, d in enumerate(shifts):                     # unrolled: 9 static taps
        shifted = h1 if d == 0 else pltpu.roll(h1, shift=(-d) % m1, axis=1)
        tap_w = w2[t * planes:(t + 1) * planes, :]     # (planes, planes)
        acc = acc + masks[t:t + 1, :] * jnp.dot(
            tap_w, shifted, preferred_element_type=jnp.float32)
    h2 = jnp.maximum(acc + b2_ref[...], 0.0)           # (planes, M1), folded bn2 + relu

    # --- stride-s spatial subsample via constant 0/1 selection matmul ---
    if has_sel:
        sel = sel_ref[...]                             # (M1, M2)
        h2 = jnp.dot(h2, sel, preferred_element_type=jnp.float32)      # (planes, M2)
        xs = jnp.dot(x, sel, preferred_element_type=jnp.float32)       # (Cin, M2)
    else:
        xs = x

    # --- shortcut: projection 1x1 conv + folded bn, or identity ---
    if has_proj:
        res = jnp.dot(ws_ref[...], xs, preferred_element_type=jnp.float32) + bs_ref[...]
    else:
        res = xs                                       # Cin == EXPANSION*planes

    # --- conv3 (1x1) + folded bn3 + residual add + relu (fused epilogue) ---
    out = jnp.dot(w3_ref[...], h2, preferred_element_type=jnp.float32) + b3_ref[...] + res
    out_ref[...] = jnp.maximum(out, 0.0).astype(out_ref.dtype)


# ------------------------------- wrapper -----------------------------------

def _bn_fold(gamma, beta, running_mean, running_var, eps=BN_EPS):
    scale = gamma / jnp.sqrt(running_var + eps)
    bias = beta - running_mean * scale
    return scale, bias


def bottleneck_forward(x_nchw, params, stride):
    """Bottleneck forward: (N, Cin, H, W) f32 -> (N, 4*planes, Ho, Wo) f32."""
    N, Cin, H, W = x_nchw.shape
    planes = params["conv1_w"].shape[0]
    out_planes = EXPANSION * planes
    Ho = (H + 2 - 3) // stride + 1
    Wo = (W + 2 - 3) // stride + 1
    M1, M2 = N * H * W, N * Ho * Wo

    # One transpose at entry: NCHW -> channel-major (Cin, N*H*W), lane-dense.
    x2d = jnp.transpose(x_nchw, (1, 0, 2, 3)).reshape(Cin, M1)

    # Fold inference-mode BN scale into the conv weights (wrapper-side math).
    s1, b1 = _bn_fold(*params["bn1"])
    s2, b2 = _bn_fold(*params["bn2"])
    s3, b3 = _bn_fold(*params["bn3"])
    w1 = params["conv1_w"][:, :, 0, 0] * s1[:, None]                  # (planes, Cin)
    w3 = params["conv3_w"][:, :, 0, 0] * s3[:, None]                  # (out_planes, planes)
    w2 = params["conv2_w"] * s2[:, None, None, None]                  # (planes, planes, 3, 3)
    w2_taps = jnp.transpose(w2, (2, 3, 0, 1)).reshape(9 * planes, planes)

    # Static per-tap lane shifts + border-validity masks (numpy, zero runtime cost).
    flat = np.arange(M1)
    hh, ww = (flat // W) % H, flat % W
    shifts, mask_rows = [], []
    for kh in range(3):
        for kw in range(3):
            dh, dw = kh - 1, kw - 1
            shifts.append(dh * W + dw)
            valid = (hh + dh >= 0) & (hh + dh < H) & (ww + dw >= 0) & (ww + dw < W)
            mask_rows.append(valid.astype(np.float32))
    masks = jnp.asarray(np.stack(mask_rows))                          # (9, M1)

    has_sel = stride != 1
    has_proj = (stride != 1) or (Cin != out_planes)

    args = [x2d, w1, b1.reshape(planes, 1), w2_taps, b2.reshape(planes, 1),
            masks, w3, b3.reshape(out_planes, 1)]
    if has_sel:
        # 0/1 selection: column m2=(n,ho,wo) picks full-res flat index (n, ho*s, wo*s).
        sel = np.zeros((M1, M2), np.float32)
        src = (np.arange(N)[:, None, None] * H * W
               + np.arange(Ho)[None, :, None] * stride * W
               + np.arange(Wo)[None, None, :] * stride).reshape(-1)
        sel[src, np.arange(M2)] = 1.0
        args.append(jnp.asarray(sel))
    if has_proj:
        ss, bs = _bn_fold(*params["short_bn"])
        args.append(params["short_w"][:, :, 0, 0] * ss[:, None])      # (out_planes, Cin)
        args.append(bs.reshape(out_planes, 1))

    kernel = functools.partial(_bottleneck_kernel, shifts=tuple(shifts),
                               has_sel=has_sel, has_proj=has_proj)
    out2d = pl.pallas_call(
        kernel,
        out_shape=jax.ShapeDtypeStruct((out_planes, M2), jnp.float32),
        grid_spec=pltpu.PrefetchScalarGridSpec(
            num_scalar_prefetch=0,
            grid=(1,),   # whole block fits VMEM -> single step, no pipeline overhead
            in_specs=[pl.BlockSpec(a.shape, lambda i: (0, 0)) for a in args],
            out_specs=pl.BlockSpec((out_planes, M2), lambda i: (0, 0)),
        ),
        compiler_params=pltpu.CompilerParams(dimension_semantics=("arbitrary",)),
    )(*args)

    # One transpose at exit: (out_planes, N*Ho*Wo) -> NCHW.
    return jnp.transpose(out2d.reshape(out_planes, N, Ho, Wo), (1, 0, 2, 3))


# --------------------------- pure-JAX reference ----------------------------

def _reference(x_nchw, params, stride):
    x = jnp.transpose(x_nchw, (0, 2, 3, 1))

    def conv(x, w_oihw, s, pad):
        w = jnp.transpose(w_oihw, (2, 3, 1, 0))  # OIHW -> HWIO
        return jax.lax.conv_general_dilated(
            x, w, (s, s), pad, dimension_numbers=("NHWC", "HWIO", "NHWC"))

    def bn(x, p):
        g, b, m, v = p
        return (x - m) / jnp.sqrt(v + BN_EPS) * g + b

    o = jax.nn.relu(bn(conv(x, params["conv1_w"], 1, "VALID"), params["bn1"]))
    o = jax.nn.relu(bn(conv(o, params["conv2_w"], stride, ((1, 1), (1, 1))), params["bn2"]))
    o = bn(conv(o, params["conv3_w"], 1, "VALID"), params["bn3"])
    if "short_w" in params:
        s = bn(conv(x, params["short_w"], stride, "VALID"), params["short_bn"])
    else:
        s = x
    o = jax.nn.relu(o + s)
    return jnp.transpose(o, (0, 3, 1, 2))


# --------------------------------- main ------------------------------------

def _init_params(key, in_planes, planes, stride):
    out_planes = EXPANSION * planes
    ks = jax.random.split(key, 8)

    def bn_params(k, c):
        k1, k2, k3, k4 = jax.random.split(k, 4)
        gamma = jax.random.uniform(k1, (c,), jnp.float32, 0.5, 1.5)
        beta = 0.1 * jax.random.normal(k2, (c,), jnp.float32)
        rmean = 0.1 * jax.random.normal(k3, (c,), jnp.float32)
        rvar = jax.random.uniform(k4, (c,), jnp.float32, 0.5, 1.5)
        return (gamma, beta, rmean, rvar)

    params = {
        "conv1_w": 0.2 * jax.random.normal(ks[0], (planes, in_planes, 1, 1), jnp.float32),
        "bn1": bn_params(ks[1], planes),
        "conv2_w": 0.2 * jax.random.normal(ks[2], (planes, planes, 3, 3), jnp.float32),
        "bn2": bn_params(ks[3], planes),
        "conv3_w": 0.2 * jax.random.normal(ks[4], (out_planes, planes, 1, 1), jnp.float32),
        "bn3": bn_params(ks[5], out_planes),
    }
    if stride != 1 or in_planes != out_planes:   # projection shortcut, as in PyTorch
        params["short_w"] = 0.2 * jax.random.normal(
            ks[6], (out_planes, in_planes, 1, 1), jnp.float32)
        params["short_bn"] = bn_params(ks[7], out_planes)
    return params


if __name__ == "__main__":
    key = jax.random.PRNGKey(0)
    k_x, k_p, k_x2, k_p2 = jax.random.split(key, 4)

    # Case 1: projection shortcut, stride 2 (canonical small config).
    N, in_planes, H, W = 2, 4, 16, 16
    planes, stride = 4, 2
    x = jax.random.normal(k_x, (N, in_planes, H, W), jnp.float32)   # NCHW, like PyTorch
    params = _init_params(k_p, in_planes, planes, stride)
    out = jax.block_until_ready(bottleneck_forward(x, params, stride))
    ref = jax.block_until_ready(_reference(x, params, stride))
    assert out.shape == (N, EXPANSION * planes, H // stride, W // stride), out.shape
    np.testing.assert_allclose(np.asarray(out), np.asarray(ref), rtol=1e-4, atol=1e-4)

    # Case 2: identity shortcut, stride 1 (in_planes == 4 * planes).
    N2, in_planes2, H2, W2 = 2, 16, 8, 8
    planes2, stride2 = 4, 1
    x2 = jax.random.normal(k_x2, (N2, in_planes2, H2, W2), jnp.float32)
    params2 = _init_params(k_p2, in_planes2, planes2, stride2)
    out2 = jax.block_until_ready(bottleneck_forward(x2, params2, stride2))
    ref2 = jax.block_until_ready(_reference(x2, params2, stride2))
    assert out2.shape == (N2, EXPANSION * planes2, H2, W2), out2.shape
    np.testing.assert_allclose(np.asarray(out2), np.asarray(ref2), rtol=1e-4, atol=1e-4)

    print("KERNEL_OK")
</pallas_src>

<mosaic_0001>
module attributes {stable_mosaic.version = 11 : i64} {
  func.func @_bottleneck_kernel(%arg0: i32, %arg1: memref<4x512xf32, #tpu.memory_space<vmem>>, %arg2: memref<4x4xf32, #tpu.memory_space<vmem>>, %arg3: memref<4x1xf32, #tpu.memory_space<vmem>>, %arg4: memref<36x4xf32, #tpu.memory_space<vmem>>, %arg5: memref<4x1xf32, #tpu.memory_space<vmem>>, %arg6: memref<9x512xf32, #tpu.memory_space<vmem>>, %arg7: memref<16x4xf32, #tpu.memory_space<vmem>>, %arg8: memref<16x1xf32, #tpu.memory_space<vmem>>, %arg9: memref<512x128xf32, #tpu.memory_space<vmem>>, %arg10: memref<16x4xf32, #tpu.memory_space<vmem>>, %arg11: memref<16x1xf32, #tpu.memory_space<vmem>>, %arg12: memref<16x128xf32, #tpu.memory_space<vmem>>) attributes {dimension_semantics = [#tpu.dimension_semantics<arbitrary>], iteration_bounds = array<i64: 1>, scalar_prefetch = 0 : i64, scratch_operands = 0 : i64, tpu.core_type = #tpu.core_type<tc>, window_params = [{pipeline_mode = #tpu.pipeline_mode<synchronous>, transform_indices = @transform_0, window_bounds = array<i64: 4, 512>}, {pipeline_mode = #tpu.pipeline_mode<synchronous>, transform_indices = @transform_1, window_bounds = array<i64: 4, 4>}, {pipeline_mode = #tpu.pipeline_mode<synchronous>, transform_indices = @transform_2, window_bounds = array<i64: 4, 1>}, {pipeline_mode = #tpu.pipeline_mode<synchronous>, transform_indices = @transform_3, window_bounds = array<i64: 36, 4>}, {pipeline_mode = #tpu.pipeline_mode<synchronous>, transform_indices = @transform_4, window_bounds = array<i64: 4, 1>}, {pipeline_mode = #tpu.pipeline_mode<synchronous>, transform_indices = @transform_5, window_bounds = array<i64: 9, 512>}, {pipeline_mode = #tpu.pipeline_mode<synchronous>, transform_indices = @transform_6, window_bounds = array<i64: 16, 4>}, {pipeline_mode = #tpu.pipeline_mode<synchronous>, transform_indices = @transform_7, window_bounds = array<i64: 16, 1>}, {pipeline_mode = #tpu.pipeline_mode<synchronous>, transform_indices = @transform_8, window_bounds = array<i64: 512, 128>}, {pipeline_mode = #tpu.pipeline_mode<synchronous>, transform_indices = @transform_9, window_bounds = array<i64: 16, 4>}, {pipeline_mode = #tpu.pipeline_mode<synchronous>, transform_indices = @transform_10, window_bounds = array<i64: 16, 1>}, {pipeline_mode = #tpu.pipeline_mode<synchronous>, transform_indices = @transform_11, window_bounds = array<i64: 16, 128>}]} {
    %c0 = arith.constant 0 : index
    %c0_0 = arith.constant 0 : index
    %0 = vector.load %arg1[%c0, %c0_0] : memref<4x512xf32, #tpu.memory_space<vmem>>, vector<4x512xf32>
    %c0_1 = arith.constant 0 : index
    %c0_2 = arith.constant 0 : index
    %1 = vector.load %arg2[%c0_1, %c0_2] : memref<4x4xf32, #tpu.memory_space<vmem>>, vector<4x4xf32>
    %cst = arith.constant dense<0.000000e+00> : vector<4x512xf32>
    %2 = tpu.matmul %1, %0, %cst {dimension_numbers = #tpu.dot_dimension_numbers<[1], [0], [0], [1], [0, 0, 1, 1], [], []>} : vector<4x4xf32>, vector<4x512xf32>, vector<4x512xf32> -> vector<4x512xf32>
    %c0_3 = arith.constant 0 : index
    %c0_4 = arith.constant 0 : index
    %3 = vector.load %arg3[%c0_3, %c0_4] : memref<4x1xf32, #tpu.memory_space<vmem>>, vector<4x1xf32>
    %4 = vector.broadcast %3 : vector<4x1xf32> to vector<4x512xf32>
    %5 = arith.addf %2, %4 : vector<4x512xf32>
    %cst_5 = arith.constant 0.000000e+00 : f32
    %6 = vector.broadcast %cst_5 : f32 to vector<4x512xf32>
    %7 = arith.maximumf %5, %6 : vector<4x512xf32>
    %c0_6 = arith.constant 0 : index
    %c0_7 = arith.constant 0 : index
    %8 = vector.load %arg6[%c0_6, %c0_7] : memref<9x512xf32, #tpu.memory_space<vmem>>, vector<9x512xf32>
    %c0_8 = arith.constant 0 : index
    %c0_9 = arith.constant 0 : index
    %9 = vector.load %arg4[%c0_8, %c0_9] : memref<36x4xf32, #tpu.memory_space<vmem>>, vector<36x4xf32>
    %cst_10 = arith.constant 0.000000e+00 : f32
    %10 = vector.broadcast %cst_10 : f32 to vector<4x512xf32>
    %c17_i32 = arith.constant 17 : i32
    %11 = tpu.dynamic_rotate %7 by %c17_i32 dim 1 : vector<4x512xf32>, i32 -> vector<4x512xf32>
    %12 = vector.extract_strided_slice %9 {offsets = [0, 0], sizes = [4, 4], strides = [1, 1]} : vector<36x4xf32> to vector<4x4xf32>
    %13 = vector.extract_strided_slice %8 {offsets = [0, 0], sizes = [1, 512], strides = [1, 1]} : vector<9x512xf32> to vector<1x512xf32>
    %cst_11 = arith.constant dense<0.000000e+00> : vector<4x512xf32>
    %14 = tpu.matmul %12, %11, %cst_11 {dimension_numbers = #tpu.dot_dimension_numbers<[1], [0], [0], [1], [0, 0, 1, 1], [], []>} : vector<4x4xf32>, vector<4x512xf32>, vector<4x512xf32> -> vector<4x512xf32>
    %15 = vector.broadcast %13 : vector<1x512xf32> to vector<4x512xf32>
    %16 = arith.mulf %15, %14 : vector<4x512xf32>
    %17 = arith.addf %10, %16 : vector<4x512xf32>
    %c16_i32 = arith.constant 16 : i32
    %18 = tpu.dynamic_rotate %7 by %c16_i32 dim 1 : vector<4x512xf32>, i32 -> vector<4x512xf32>
    %19 = vector.extract_strided_slice %9 {offsets = [4, 0], sizes = [4, 4], strides = [1, 1]} : vector<36x4xf32> to vector<4x4xf32>
    %20 = vector.extract_strided_slice %8 {offsets = [1, 0], sizes = [1, 512], strides = [1, 1]} : vector<9x512xf32> to vector<1x512xf32>
    %cst_12 = arith.constant dense<0.000000e+00> : vector<4x512xf32>
    %21 = tpu.matmul %19, %18, %cst_12 {dimension_numbers = #tpu.dot_dimension_numbers<[1], [0], [0], [1], [0, 0, 1, 1], [], []>} : vector<4x4xf32>, vector<4x512xf32>, vector<4x512xf32> -> vector<4x512xf32>
    %22 = vector.broadcast %20 : vector<1x512xf32> to vector<4x512xf32>
    %23 = arith.mulf %22, %21 : vector<4x512xf32>
    %24 = arith.addf %17, %23 : vector<4x512xf32>
    %c15_i32 = arith.constant 15 : i32
    %25 = tpu.dynamic_rotate %7 by %c15_i32 dim 1 : vector<4x512xf32>, i32 -> vector<4x512xf32>
    %26 = vector.extract_strided_slice %9 {offsets = [8, 0], sizes = [4, 4], strides = [1, 1]} : vector<36x4xf32> to vector<4x4xf32>
    %27 = vector.extract_strided_slice %8 {offsets = [2, 0], sizes = [1, 512], strides = [1, 1]} : vector<9x512xf32> to vector<1x512xf32>
    %cst_13 = arith.constant dense<0.000000e+00> : vector<4x512xf32>
    %28 = tpu.matmul %26, %25, %cst_13 {dimension_numbers = #tpu.dot_dimension_numbers<[1], [0], [0], [1], [0, 0, 1, 1], [], []>} : vector<4x4xf32>, vector<4x512xf32>, vector<4x512xf32> -> vector<4x512xf32>
    %29 = vector.broadcast %27 : vector<1x512xf32> to vector<4x512xf32>
    %30 = arith.mulf %29, %28 : vector<4x512xf32>
    %31 = arith.addf %24, %30 : vector<4x512xf32>
    %c1_i32 = arith.constant 1 : i32
    %32 = tpu.dynamic_rotate %7 by %c1_i32 dim 1 : vector<4x512xf32>, i32 -> vector<4x512xf32>
    %33 = vector.extract_strided_slice %9 {offsets = [12, 0], sizes = [4, 4], strides = [1, 1]} : vector<36x4xf32> to vector<4x4xf32>
    %34 = vector.extract_strided_slice %8 {offsets = [3, 0], sizes = [1, 512], strides = [1, 1]} : vector<9x512xf32> to vector<1x512xf32>
    %cst_14 = arith.constant dense<0.000000e+00> : vector<4x512xf32>
    %35 = tpu.matmul %33, %32, %cst_14 {dimension_numbers = #tpu.dot_dimension_numbers<[1], [0], [0], [1], [0, 0, 1, 1], [], []>} : vector<4x4xf32>, vector<4x512xf32>, vector<4x512xf32> -> vector<4x512xf32>
    %36 = vector.broadcast %34 : vector<1x512xf32> to vector<4x512xf32>
    %37 = arith.mulf %36, %35 : vector<4x512xf32>
    %38 = arith.addf %31, %37 : vector<4x512xf32>
    %39 = vector.extract_strided_slice %9 {offsets = [16, 0], sizes = [4, 4], strides = [1, 1]} : vector<36x4xf32> to vector<4x4xf32>
    %40 = vector.extract_strided_slice %8 {offsets = [4, 0], sizes = [1, 512], strides = [1, 1]} : vector<9x512xf32> to vector<1x512xf32>
    %cst_15 = arith.constant dense<0.000000e+00> : vector<4x512xf32>
    %41 = tpu.matmul %39, %7, %cst_15 {dimension_numbers = #tpu.dot_dimension_numbers<[1], [0], [0], [1], [0, 0, 1, 1], [], []>} : vector<4x4xf32>, vector<4x512xf32>, vector<4x512xf32> -> vector<4x512xf32>
    %42 = vector.broadcast %40 : vector<1x512xf32> to vector<4x512xf32>
    %43 = arith.mulf %42, %41 : vector<4x512xf32>
    %44 = arith.addf %38, %43 : vector<4x512xf32>
    %c511_i32 = arith.constant 511 : i32
    %45 = tpu.dynamic_rotate %7 by %c511_i32 dim 1 : vector<4x512xf32>, i32 -> vector<4x512xf32>
    %46 = vector.extract_strided_slice %9 {offsets = [20, 0], sizes = [4, 4], strides = [1, 1]} : vector<36x4xf32> to vector<4x4xf32>
    %47 = vector.extract_strided_slice %8 {offsets = [5, 0], sizes = [1, 512], strides = [1, 1]} : vector<9x512xf32> to vector<1x512xf32>
    %cst_16 = arith.constant dense<0.000000e+00> : vector<4x512xf32>
    %48 = tpu.matmul %46, %45, %cst_16 {dimension_numbers = #tpu.dot_dimension_numbers<[1], [0], [0], [1], [0, 0, 1, 1], [], []>} : vector<4x4xf32>, vector<4x512xf32>, vector<4x512xf32> -> vector<4x512xf32>
    %49 = vector.broadcast %47 : vector<1x512xf32> to vector<4x512xf32>
    %50 = arith.mulf %49, %48 : vector<4x512xf32>
    %51 = arith.addf %44, %50 : vector<4x512xf32>
    %c497_i32 = arith.constant 497 : i32
    %52 = tpu.dynamic_rotate %7 by %c497_i32 dim 1 : vector<4x512xf32>, i32 -> vector<4x512xf32>
    %53 = vector.extract_strided_slice %9 {offsets = [24, 0], sizes = [4, 4], strides = [1, 1]} : vector<36x4xf32> to vector<4x4xf32>
    %54 = vector.extract_strided_slice %8 {offsets = [6, 0], sizes = [1, 512], strides = [1, 1]} : vector<9x512xf32> to vector<1x512xf32>
    %cst_17 = arith.constant dense<0.000000e+00> : vector<4x512xf32>
    %55 = tpu.matmul %53, %52, %cst_17 {dimension_numbers = #tpu.dot_dimension_numbers<[1], [0], [0], [1], [0, 0, 1, 1], [], []>} : vector<4x4xf32>, vector<4x512xf32>, vector<4x512xf32> -> vector<4x512xf32>
    %56 = vector.broadcast %54 : vector<1x512xf32> to vector<4x512xf32>
    %57 = arith.mulf %56, %55 : vector<4x512xf32>
    %58 = arith.addf %51, %57 : vector<4x512xf32>
    %c496_i32 = arith.constant 496 : i32
    %59 = tpu.dynamic_rotate %7 by %c496_i32 dim 1 : vector<4x512xf32>, i32 -> vector<4x512xf32>
    %60 = vector.extract_strided_slice %9 {offsets = [28, 0], sizes = [4, 4], strides = [1, 1]} : vector<36x4xf32> to vector<4x4xf32>
    %61 = vector.extract_strided_slice %8 {offsets = [7, 0], sizes = [1, 512], strides = [1, 1]} : vector<9x512xf32> to vector<1x512xf32>
    %cst_18 = arith.constant dense<0.000000e+00> : vector<4x512xf32>
    %62 = tpu.matmul %60, %59, %cst_18 {dimension_numbers = #tpu.dot_dimension_numbers<[1], [0], [0], [1], [0, 0, 1, 1], [], []>} : vector<4x4xf32>, vector<4x512xf32>, vector<4x512xf32> -> vector<4x512xf32>
    %63 = vector.broadcast %61 : vector<1x512xf32> to vector<4x512xf32>
    %64 = arith.mulf %63, %62 : vector<4x512xf32>
    %65 = arith.addf %58, %64 : vector<4x512xf32>
    %c495_i32 = arith.constant 495 : i32
    %66 = tpu.dynamic_rotate %7 by %c495_i32 dim 1 : vector<4x512xf32>, i32 -> vector<4x512xf32>
    %67 = vector.extract_strided_slice %9 {offsets = [32, 0], sizes = [4, 4], strides = [1, 1]} : vector<36x4xf32> to vector<4x4xf32>
    %68 = vector.extract_strided_slice %8 {offsets = [8, 0], sizes = [1, 512], strides = [1, 1]} : vector<9x512xf32> to vector<1x512xf32>
    %cst_19 = arith.constant dense<0.000000e+00> : vector<4x512xf32>
    %69 = tpu.matmul %67, %66, %cst_19 {dimension_numbers = #tpu.dot_dimension_numbers<[1], [0], [0], [1], [0, 0, 1, 1], [], []>} : vector<4x4xf32>, vector<4x512xf32>, vector<4x512xf32> -> vector<4x512xf32>
    %70 = vector.broadcast %68 : vector<1x512xf32> to vector<4x512xf32>
    %71 = arith.mulf %70, %69 : vector<4x512xf32>
    %72 = arith.addf %65, %71 : vector<4x512xf32>
    %c0_20 = arith.constant 0 : index
    %c0_21 = arith.constant 0 : index
    %73 = vector.load %arg5[%c0_20, %c0_21] : memref<4x1xf32, #tpu.memory_space<vmem>>, vector<4x1xf32>
    %74 = vector.broadcast %73 : vector<4x1xf32> to vector<4x512xf32>
    %75 = arith.addf %72, %74 : vector<4x512xf32>
    %cst_22 = arith.constant 0.000000e+00 : f32
    %76 = vector.broadcast %cst_22 : f32 to vector<4x512xf32>
    %77 = arith.maximumf %75, %76 : vector<4x512xf32>
    %c0_23 = arith.constant 0 : index
    %c0_24 = arith.constant 0 : index
    %78 = vector.load %arg9[%c0_23, %c0_24] : memref<512x128xf32, #tpu.memory_space<vmem>>, vector<512x128xf32>
    %cst_25 = arith.constant dense<0.000000e+00> : vector<4x128xf32>
    %79 = tpu.matmul %77, %78, %cst_25 {dimension_numbers = #tpu.dot_dimension_numbers<[1], [0], [0], [1], [0, 0, 1, 1], [], []>} : vector<4x512xf32>, vector<512x128xf32>, vector<4x128xf32> -> vector<4x128xf32>
    %cst_26 = arith.constant dense<0.000000e+00> : vector<4x128xf32>
    %80 = tpu.matmul %0, %78, %cst_26 {dimension_numbers = #tpu.dot_dimension_numbers<[1], [0], [0], [1], [0, 0, 1, 1], [], []>} : vector<4x512xf32>, vector<512x128xf32>, vector<4x128xf32> -> vector<4x128xf32>
    %c0_27 = arith.constant 0 : index
    %c0_28 = arith.constant 0 : index
    %81 = vector.load %arg10[%c0_27, %c0_28] : memref<16x4xf32, #tpu.memory_space<vmem>>, vector<16x4xf32>
    %cst_29 = arith.constant dense<0.000000e+00> : vector<16x128xf32>
    %82 = tpu.matmul %81, %80, %cst_29 {dimension_numbers = #tpu.dot_dimension_numbers<[1], [0], [0], [1], [0, 0, 1, 1], [], []>} : vector<16x4xf32>, vector<4x128xf32>, vector<16x128xf32> -> vector<16x128xf32>
    %c0_30 = arith.constant 0 : index
    %c0_31 = arith.constant 0 : index
    %83 = vector.load %arg11[%c0_30, %c0_31] : memref<16x1xf32, #tpu.memory_space<vmem>>, vector<16x1xf32>
    %84 = vector.broadcast %83 : vector<16x1xf32> to vector<16x128xf32>
    %85 = arith.addf %82, %84 : vector<16x128xf32>
    %c0_32 = arith.constant 0 : index
    %c0_33 = arith.constant 0 : index
    %86 = vector.load %arg7[%c0_32, %c0_33] : memref<16x4xf32, #tpu.memory_space<vmem>>, vector<16x4xf32>
    %cst_34 = arith.constant dense<0.000000e+00> : vector<16x128xf32>
    %87 = tpu.matmul %86, %79, %cst_34 {dimension_numbers = #tpu.dot_dimension_numbers<[1], [0], [0], [1], [0, 0, 1, 1], [], []>} : vector<16x4xf32>, vector<4x128xf32>, vector<16x128xf32> -> vector<16x128xf32>
    %c0_35 = arith.constant 0 : index
    %c0_36 = arith.constant 0 : index
    %88 = vector.load %arg8[%c0_35, %c0_36] : memref<16x1xf32, #tpu.memory_space<vmem>>, vector<16x1xf32>
    %89 = vector.broadcast %88 : vector<16x1xf32> to vector<16x128xf32>
    %90 = arith.addf %87, %89 : vector<16x128xf32>
    %91 = arith.addf %90, %85 : vector<16x128xf32>
    %cst_37 = arith.constant 0.000000e+00 : f32
    %92 = vector.broadcast %cst_37 : f32 to vector<16x128xf32>
    %93 = arith.maximumf %91, %92 : vector<16x128xf32>
    %c0_38 = arith.constant 0 : index
    %c0_39 = arith.constant 0 : index
    %94 = vector.load %arg12[%c0_38, %c0_39] : memref<16x128xf32, #tpu.memory_space<vmem>>, vector<16x128xf32>
    tpu.vector_store %arg12[%c0_38, %c0_39], %93 {strides = array<i32>} : memref<16x128xf32, #tpu.memory_space<vmem>>, vector<16x128xf32>,
    return
  }
  func.func @transform_0(%arg0: i32) -> (i32, i32) {
    %c0_i32 = arith.constant 0 : i32
    %c0_i32_0 = arith.constant 0 : i32
    %c0_i32_1 = arith.constant 0 : i32
    return %c0_i32, %c0_i32_0 : i32, i32
  }
  func.func @transform_1(%arg0: i32) -> (i32, i32) {
    %c0_i32 = arith.constant 0 : i32
    %c0_i32_0 = arith.constant 0 : i32
    %c0_i32_1 = arith.constant 0 : i32
    return %c0_i32, %c0_i32_0 : i32, i32
  }
  func.func @transform_2(%arg0: i32) -> (i32, i32) {
    %c0_i32 = arith.constant 0 : i32
    %c0_i32_0 = arith.constant 0 : i32
    %c0_i32_1 = arith.constant 0 : i32
    return %c0_i32, %c0_i32_0 : i32, i32
  }
  func.func @transform_3(%arg0: i32) -> (i32, i32) {
    %c0_i32 = arith.constant 0 : i32
    %c0_i32_0 = arith.constant 0 : i32
    %c0_i32_1 = arith.constant 0 : i32
    return %c0_i32, %c0_i32_0 : i32, i32
  }
  func.func @transform_4(%arg0: i32) -> (i32, i32) {
    %c0_i32 = arith.constant 0 : i32
    %c0_i32_0 = arith.constant 0 : i32
    %c0_i32_1 = arith.constant 0 : i32
    return %c0_i32, %c0_i32_0 : i32, i32
  }
  func.func @transform_5(%arg0: i32) -> (i32, i32) {
    %c0_i32 = arith.constant 0 : i32
    %c0_i32_0 = arith.constant 0 : i32
    %c0_i32_1 = arith.constant 0 : i32
    return %c0_i32, %c0_i32_0 : i32, i32
  }
  func.func @transform_6(%arg0: i32) -> (i32, i32) {
    %c0_i32 = arith.constant 0 : i32
    %c0_i32_0 = arith.constant 0 : i32
    %c0_i32_1 = arith.constant 0 : i32
    return %c0_i32, %c0_i32_0 : i32, i32
  }
  func.func @transform_7(%arg0: i32) -> (i32, i32) {
    %c0_i32 = arith.constant 0 : i32
    %c0_i32_0 = arith.constant 0 : i32
    %c0_i32_1 = arith.constant 0 : i32
    return %c0_i32, %c0_i32_0 : i32, i32
  }
  func.func @transform_8(%arg0: i32) -> (i32, i32) {
    %c0_i32 = arith.constant 0 : i32
    %c0_i32_0 = arith.constant 0 : i32
    %c0_i32_1 = arith.constant 0 : i32
    return %c0_i32, %c0_i32_0 : i32, i32
  }
  func.func @transform_9(%arg0: i32) -> (i32, i32) {
    %c0_i32 = arith.constant 0 : i32
    %c0_i32_0 = arith.constant 0 : i32
    %c0_i32_1 = arith.constant 0 : i32
    return %c0_i32, %c0_i32_0 : i32, i32
  }
  func.func @transform_10(%arg0: i32) -> (i32, i32) {
    %c0_i32 = arith.constant 0 : i32
    %c0_i32_0 = arith.constant 0 : i32
    %c0_i32_1 = arith.constant 0 : i32
    return %c0_i32, %c0_i32_0 : i32, i32
  }
  func.func @transform_11(%arg0: i32) -> (i32, i32) {
    %c0_i32 = arith.constant 0 : i32
    %c0_i32_0 = arith.constant 0 : i32
    %c0_i32_1 = arith.constant 0 : i32
    return %c0_i32, %c0_i32_0 : i32, i32
  }
}

</mosaic_0001>

<bundles_post_ra>
// kernel: tpu_custom_call.1
= control target key start
LH: loop header
LB: loop body
LE: loop exit
PB: predicated region body
PF: predicated region fallthrough
CT: control target
= control target key end

     0   :  { %16 = vsyncpa [#allocation3], 0  ;;  %s3558_s0 = inlined_call_operand.vmem [shape: f32[4,512], index: 0, kind: input, shape index: {}]   ;;  %s3559_s1 = inlined_call_operand.vmem [shape: f32[4,4], index: 1, kind: input, shape index: {}]   ;;  %s3560_s2 = inlined_call_operand.vmem [shape: f32[4,1], index: 2, kind: input, shape index: {}]   ;;  %s3561_s3 = inlined_call_operand.vmem [shape: f32[36,4], index: 3, kind: input, shape index: {}]   ;;  %s3562_s4 = inlined_call_operand.vmem [shape: f32[4,1], index: 4, kind: input, shape index: {}]   ;;  %s3563_s5 = inlined_call_operand.vmem [shape: f32[9,512], index: 5, kind: input, shape index: {}]   ;;  %s3564_s6 = inlined_call_operand.vmem [shape: f32[16,4], index: 6, kind: input, shape index: {}]   ;;  %s3565_s7 = inlined_call_operand.vmem [shape: f32[16,1], index: 7, kind: input, shape index: {}]   ;;  %s3566_s8 = inlined_call_operand.hbm [shape: f32[512,128], index: 8, kind: input, shape index: {}]   ;;  %s3567_s9 = inlined_call_operand.vmem [shape: f32[16,4], index: 9, kind: input, shape index: {}]   ;;  %s3568_s10 = inlined_call_operand.vmem [shape: f32[16,1], index: 10, kind: input, shape index: {}]   ;;  %s3569_s11 = inlined_call_operand.hbm [shape: f32[16,128], index: 11, kind: output, shape index: {}]  }
   0x1   :  { %17 = vsyncpa [#allocation4], 0  ;;  %s2980_s17 = smov [#allocation2]   ;;  %s2932_s21 = scalar_lea.hbm %s3566_s8, 8192 }
   0x2   :  { %s39_s18 = sshll.u32 %s2980_s17, 4  ;;  %p2933_p0 = scmp.ne.s32.totalorder %s3566_s8, %s2932_s21  ;;  %s40_s18 = int_to_ptr.vmem [resolvable:$true] %s39_s18 }
   0x3   :  { %p2936_p1 = scmp.lt.u32.totalorder %s2932_s21, %s3566_s8 }
   0x5   :  { %p2938_p2 = pnand %p2936_p1, %p2933_p0 }
   0x7   :  { %2941 = shalt.err (!%p2938_p2)
}
   0x8   :  { %s2942_s26 = scalar_lea.vmem %s40_s18, 8192  ;;  %p2947_p4 = scmp.lt.s32.totalorder %s40_s18, %s40_s18 }
   0x9   :  { %p2943_p3 = scmp.ne.s32.totalorder %s40_s18, %s2942_s26  ;;  %p2948_p5 = scmp.lt.s32.totalorder %s2942_s26, %s2942_s26 }
   0xb   :  { %p2949_p6 = por %p2948_p5, %p2947_p4 }
   0xd   :  { %p2950_p7 = pnand %p2949_p6, %p2943_p3 }
   0xf   :  { %2953 = shalt.err (!%p2950_p7)
}
  0x10   :  { %s2981_s27 = smov 128   ;;  %s2982_s28 = smov 8  }
  0x11   :  { %45 = dma.hbm_to_vmem [thread:$0]  %s3566_s8, 8192, %s40_s18, [#allocation3], %s2981_s27, %s2981_s27, %s2982_s28  }
  0x12   :  { %2976 = dma.done.wait [#allocation3], 8192  }
  0x13   :  { %2977 = vsyncadd [#allocation3], 4294959104  ;;  %v2983_v0 = vmov 0.0   ;;  %v2984_v1 = vmov 0   ;;  %v53_v2 = vld [vmem:[%s3558_s0] sm:$0xff]  ;;  %vm70_vm0 = vcmask 1043456   ;;  %v246_v34 = vlaneseq }
  0x14   :  { %143 = vmatprep.mubr.f32.mxu1 %v2983_v0  ;;  %2926 = vset.pattern.permute.xlu0 %v2984_v1  ;;  %v54_v3 = vld [vmem:[%s3558_s0 + $0x8] sm:$0xff]  ;;  %v3077_v4 = vcombine.high %v53_v2, %v53_v2  ;;  %v56_v6 = vld [vmem:[%s3560_s2] sm:$0xf]  ;;  %vm66_vm1 = vcmask 31744   ;;  %s2986_s2 = smov 17   ;;  %s2987_s19 = smov 15  }
  0x15   :  { %332 = vmatprep.mubr.f32.mxu0 %v2983_v0  ;;  %2927 = vset.pattern.permute.xlu1 %v2984_v1  ;;  %v3079_v5 = vcombine.high %v54_v3, %v54_v3  ;;  %v55_v7 = vld [vmem:[%s3559_s1] sm:$0xf]  ;;  %s2985_s1 = smov 16   ;;  %s2988_s20 = smov 1   ;;  %v2336_v24 = vld [vmem:[%s3568_s10 + $0x8] sm:$0xff]  ;;  %v3161_v37 = vand.u32 127, %v246_v34 }
  0x16   :  { %59 = vperm.xlu0 %2926, %v56_v6   ;;  %2552 = vmatprep.subr.msk.mxu1 %vm70_vm0, %v3077_v4  ;;  %s2989_s21 = smov 127   ;;  %s2990_s22 = smov 113   ;;  %v2335_v21 = vld [vmem:[%s3568_s10] sm:$0xff]  ;;  %v2434_v25 = vld [vmem:[%s3565_s7 + $0x8] sm:$0xff] }
  0x17   :  { %2553 = vmatpush1.msk.msra.mxu1 %vm70_vm0, %v53_v2  ;;  %s2991_s23 = smov 112   ;;  %s2992_s24 = smov 111   ;;  %v2433_v22 = vld [vmem:[%s3565_s7] sm:$0xff]  ;;  %vm248_vm2 = vcmp.lt.s32.totalorder %v3161_v37, 17  ;;  %vm442_vm3 = vcmp.lt.s32.totalorder %v3161_v37, 16  ;;  %vm636_vm4 = vcmp.lt.s32.totalorder %v3161_v37, 15 }
  0x18   :  { %2554 = vmatmul.mubr.msk.f32.vlgmr.msra.gmra.mrb[0].mxu1 %vm66_vm1, %v55_v7  ;;  %2555 = vmatprep.subr.msk.mxu1 %vm70_vm0, %v3079_v5  ;;  %v1973_v23 = vld [vmem:[%s3562_s4] sm:$0xf]  ;;  %vm830_vm5 = vcmp.lt.s32.totalorder %v3161_v37, 1  ;;  %v234_v59 = vld [vmem:[%s3561_s3 + $0x8] sm:$0xff]  ;;  %vm1205_vm6 = vcmp.lt.s32.totalorder %v3161_v37, 127  ;;  %vm1399_vm7 = vcmp.lt.s32.totalorder %v3161_v37, 113 }
  0x19   :  { %2556 = vmatpush1.msk.msra.mxu1 %vm70_vm0, %v54_v3  ;;  %214 = vmatprep.mubr.f32.mxu1 %v2983_v0  ;;  %v233_v45 = vld [vmem:[%s3561_s3] sm:$0xff]  ;;  %v835_v1 = vrot.slane %v234_v59, 4  ;;  %vm1593_vm8 = vcmp.lt.s32.totalorder %v3161_v37, 112  ;;  %vm1787_vm9 = vcmp.lt.s32.totalorder %v3161_v37, 111 }
  0x1a   :  { %v447_v50 = vrot.slane %v233_v45, 4  ;;  %v237_v37 = vld [vmem:[%s3561_s3 + $0x20] sm:$0xf] }
  0x1c   :  { %2557 = vmatmul.mubr.msk.f32.vlgmr.msra.gmra.mrb[2].mxu1 %vm66_vm1, %v55_v7 }
  0x1d   :  { %403 = vmatprep.mubr.f32.mxu1 %v2983_v0 }
  0x95   :  { %v60_v8 = vpop.permute.xlu0 %59 }
  0xeb   :  { %v145_v9 = vpop.f32.mrb[0].mxu1 }
  0xec   :  { %v146_v10 = vadd.f32 %v145_v9, %v60_v8  ;;  %v147_v11 = vpop.f32.mrb[1].mxu1 }
  0xed   :  { %v148_v13 = vadd.f32 %v147_v11, %v60_v8  ;;  %v235_v11 = vld [vmem:[%s3561_s3 + $0x10] sm:$0xff] }
  0xee   :  { %v3097_v12 = vmax.f32 %v146_v10, 0.0 }
  0xef   :  { %v216_v14 = vpop.f32.mrb[2].mxu1  ;;  %v3101_v16 = vmax.f32 %v148_v13, 0.0  ;;  %v1210_v13 = vrot.slane %v235_v11, 4 }
  0xf0   :  { %v218_v15 = vpop.f32.mrb[3].mxu1  ;;  %434 = vrot.lane.b32.xlu1 %v3097_v12, %s2985_s1  ;;  %238 = vrot.lane.b32.xlu0 %v3097_v12, %s2986_s2  ;;  %v217_v17 = vadd.f32 %v216_v14, %v60_v8 }
  0xf1   :  { %v219_v18 = vadd.f32 %v218_v15, %v60_v8 }
  0xf2   :  { %v3115_v19 = vmax.f32 %v217_v17, 0.0 }
  0xf3   :  { %v3117_v20 = vmax.f32 %v219_v18, 0.0 }
  0xf4   :  { %628 = vrot.lane.b32.xlu1 %v3097_v12, %s2987_s19  ;;  %436 = vrot.lane.b32.xlu0 %v3101_v16, %s2985_s1 }
  0xf8   :  { %822 = vrot.lane.b32.xlu1 %v3097_v12, %s2988_s20  ;;  %630 = vrot.lane.b32.xlu0 %v3101_v16, %s2987_s19 }
  0xfc   :  { %1197 = vrot.lane.b32.xlu1 %v3097_v12, %s2989_s21  ;;  %824 = vrot.lane.b32.xlu0 %v3101_v16, %s2988_s20 }
 0x100   :  { %1391 = vrot.lane.b32.xlu1 %v3097_v12, %s2990_s22  ;;  %1199 = vrot.lane.b32.xlu0 %v3101_v16, %s2989_s21 }
 0x104   :  { %1585 = vrot.lane.b32.xlu1 %v3097_v12, %s2991_s23  ;;  %1393 = vrot.lane.b32.xlu0 %v3101_v16, %s2990_s22 }
 0x108   :  { %240 = vrot.lane.b32.xlu1 %v3101_v16, %s2986_s2  ;;  %1587 = vrot.lane.b32.xlu0 %v3101_v16, %s2991_s23 }
 0x10c   :  { %242 = vrot.lane.b32.xlu1 %v3115_v19, %s2986_s2  ;;  %244 = vrot.lane.b32.xlu0 %v3117_v20, %s2986_s2 }
 0x110   :  { %438 = vrot.lane.b32.xlu1 %v3115_v19, %s2985_s1  ;;  %440 = vrot.lane.b32.xlu0 %v3117_v20, %s2985_s1 }
 0x114   :  { %632 = vrot.lane.b32.xlu1 %v3115_v19, %s2987_s19  ;;  %634 = vrot.lane.b32.xlu0 %v3117_v20, %s2987_s19 }
 0x118   :  { %826 = vrot.lane.b32.xlu1 %v3115_v19, %s2988_s20  ;;  %828 = vrot.lane.b32.xlu0 %v3117_v20, %s2988_s20 }
 0x11c   :  { %1779 = vrot.lane.b32.xlu1 %v3097_v12, %s2992_s24  ;;  %1781 = vrot.lane.b32.xlu0 %v3101_v16, %s2992_s24 }
 0x120   :  { %1201 = vrot.lane.b32.xlu1 %v3115_v19, %s2989_s21  ;;  %1203 = vrot.lane.b32.xlu0 %v3117_v20, %s2989_s21 }
 0x124   :  { %1395 = vrot.lane.b32.xlu1 %v3115_v19, %s2990_s22  ;;  %1397 = vrot.lane.b32.xlu0 %v3117_v20, %s2990_s22 }
 0x128   :  { %1589 = vrot.lane.b32.xlu1 %v3115_v19, %s2991_s23  ;;  %1591 = vrot.lane.b32.xlu0 %v3117_v20, %s2991_s23 }
 0x12c   :  { %1783 = vrot.lane.b32.xlu1 %v3115_v19, %s2992_s24  ;;  %1785 = vrot.lane.b32.xlu0 %v3117_v20, %s2992_s24 }
 0x130   :  { %2339 = vperm.xlu0 %2926, %v2335_v21   ;;  %1976 = vperm.xlu1 %2927, %v1973_v23  }
 0x134   :  { %2437 = vperm.xlu0 %2926, %v2433_v22   ;;  %2344 = vperm.xlu1 %2927, %v2336_v24   ;;  %v236_v24 = vld [vmem:[%s3561_s3 + $0x18] sm:$0xff] }
 0x138   :  { %2442 = vperm.xlu1 %2927, %v2434_v25  }
 0x162   :  { %v435_v26 = vpop.permute.xlu1 %434  ;;  %v239_v27 = vpop.permute.xlu0 %238 }
 0x166   :  { %v629_v28 = vpop.permute.xlu1 %628  ;;  %v437_v29 = vpop.permute.xlu0 %436 }
 0x167   :  { %v445_v49 = vsel %vm442_vm3, %v435_v26, %v437_v29 }
 0x16a   :  { %v3152_v30 = vpop.permute.xlu1 %822  ;;  %v631_v31 = vpop.permute.xlu0 %630 }
 0x16b   :  { %v639_v56 = vsel %vm636_vm4, %v629_v28, %v631_v31 }
 0x16e   :  { %v3154_v32 = vpop.permute.xlu1 %1197  ;;  %v825_v33 = vpop.permute.xlu0 %824 }
 0x16f   :  { %v833_v63 = vsel %vm830_vm5, %v3152_v30, %v825_v33 }
 0x172   :  { %v3156_v35 = vpop.permute.xlu1 %1391  ;;  %v3158_v36 = vpop.permute.xlu0 %1199 }
 0x173   :  { %v1208_v18 = vsel %vm1205_vm6, %v3154_v32, %v3158_v36 }
 0x176   :  { %v3163_v38 = vpop.permute.xlu1 %1585  ;;  %v3165_v39 = vpop.permute.xlu0 %1393 }
 0x177   :  { %v1402_v25 = vsel %vm1399_vm7, %v3156_v35, %v3165_v39 }
 0x17a   :  { %v241_v40 = vpop.permute.xlu1 %240  ;;  %v3168_v41 = vpop.permute.xlu0 %1587 }
 0x17b   :  { %v251_v42 = vsel %vm248_vm2, %v239_v27, %v241_v40 }
 0x17c   :  { %2558 = vmatprep.subr.msk.mxu0 %vm70_vm0, %v251_v42  ;;  %v2035_v42 = vld [vmem:[#allocation2 + $0x180] sm:$0xff] }
 0x17e   :  { %v243_v43 = vpop.permute.xlu1 %242  ;;  %v245_v44 = vpop.permute.xlu0 %244 }
 0x17f   :  { %v250_v46 = vsel %vm248_vm2, %v241_v40, %v243_v43  ;;  %v249_v47 = vsel %vm248_vm2, %v243_v43, %v245_v44  ;;  %v252_v48 = vsel %vm248_vm2, %v245_v44, %v239_v27  ;;  %v1598_v27 = vrot.slane %v236_v24, 4  ;;  %v2036_v44 = vld [vmem:[#allocation2 + $0x188] sm:$0xff] }
 0x180   :  { %2559 = vmatpush1.msk.msra.mxu0 %vm70_vm0, %v252_v48  ;;  %2561 = vmatprep.subr.msk.mxu1 %vm70_vm0, %v249_v47  ;;  %v3314_v47 = vpack.c.bf16 %v2036_v44, %v2035_v42  ;;  %v2046_v44 = vld [vmem:[#allocation2 + $0x1d8] sm:$0xff] }
 0x181   :  { %2560 = vmatmul.mubr.msk.f32.vlgmr.msra.gmra.mrb[0].mxu0 %vm66_vm1, %v233_v45  ;;  %2562 = vmatpush1.msk.msra.mxu1 %vm70_vm0, %v250_v46  ;;  %v1988_v46 = vld [vmem:[#allocation2 + $0x8] sm:$0xff] }
 0x182   :  { %2564 = vmatprep.subr.msk.mxu0 %vm70_vm0, %v445_v49  ;;  %v439_v51 = vpop.permute.xlu1 %438  ;;  %2563 = vmatmul.mubr.msk.f32.vlgmr.msra.gmra.mrb[4].mxu1 %vm66_vm1, %v233_v45  ;;  %v441_v52 = vpop.permute.xlu0 %440  ;;  %v1987_v45 = vld [vmem:[#allocation2] sm:$0xff] }
 0x183   :  { %v444_v53 = vsel %vm442_vm3, %v437_v29, %v439_v51  ;;  %v443_v54 = vsel %vm442_vm3, %v439_v51, %v441_v52  ;;  %v446_v55 = vsel %vm442_vm3, %v441_v52, %v435_v26  ;;  %526 = vmatprep.mubr.f32.mxu0 %v2983_v0  ;;  %597 = vmatprep.mubr.f32.mxu1 %v2983_v0  ;;  %v2019_v49 = vld [vmem:[#allocation2 + $0x100] sm:$0xff]  ;;  %v2005_v52 = vld [vmem:[#allocation2 + $0x90] sm:$0xff] }
 0x184   :  { %2565 = vmatpush1.msk.msra.mxu0 %vm70_vm0, %v446_v55  ;;  %2567 = vmatprep.subr.msk.mxu1 %vm70_vm0, %v443_v54  ;;  %v3316_v48 = vpack.c.bf16 %v1988_v46, %v1987_v45  ;;  %v2037_v54 = vld [vmem:[#allocation2 + $0x190] sm:$0xff]  ;;  %v1998_v46 = vld [vmem:[#allocation2 + $0x58] sm:$0xff] }
 0x185   :  { %2566 = vmatmul.mubr.msk.f32.vlgmr.msra.gmra.mrb[2].mxu0 %vm66_vm1, %v447_v50  ;;  %2568 = vmatpush1.msk.msra.mxu1 %vm70_vm0, %v444_v53  ;;  %v2006_v53 = vld [vmem:[#allocation2 + $0x98] sm:$0xff]  ;;  %v1997_v45 = vld [vmem:[#allocation2 + $0x50] sm:$0xff] }
 0x186   :  { %2570 = vmatprep.subr.msk.mxu0 %vm70_vm0, %v639_v56  ;;  %v633_v57 = vpop.permute.xlu1 %632  ;;  %2569 = vmatmul.mubr.msk.f32.vlgmr.msra.gmra.mrb[6].mxu1 %vm66_vm1, %v447_v50  ;;  %v635_v58 = vpop.permute.xlu0 %634  ;;  %v2020_v50 = vld [vmem:[#allocation2 + $0x108] sm:$0xff]  ;;  %v3324_v55 = vpack.c.bf16 %v2006_v53, %v2005_v52  ;;  %v2038_v56 = vld [vmem:[#allocation2 + $0x198] sm:$0xff]  ;;  %v2029_v52 = vld [vmem:[#allocation2 + $0x150] sm:$0xff] }
 0x187   :  { %v638_v60 = vsel %vm636_vm4, %v631_v31, %v633_v57  ;;  %v637_v61 = vsel %vm636_vm4, %v633_v57, %v635_v58  ;;  %v640_v62 = vsel %vm636_vm4, %v635_v58, %v629_v28  ;;  %720 = vmatprep.mubr.f32.mxu0 %v2983_v0  ;;  %791 = vmatprep.mubr.f32.mxu1 %v2983_v0  ;;  %v1989_v57 = vld [vmem:[#allocation2 + $0x10] sm:$0xff]  ;;  %v1990_v58 = vld [vmem:[#allocation2 + $0x18] sm:$0xff] }
 0x188   :  { %2571 = vmatpush1.msk.msra.mxu0 %vm70_vm0, %v640_v62  ;;  %2573 = vmatprep.subr.msk.mxu1 %vm70_vm0, %v637_v61  ;;  %v3319_v51 = vpack.c.bf16 %v2020_v50, %v2019_v49  ;;  %v2021_v61 = vld [vmem:[#allocation2 + $0x110] sm:$0xff]  ;;  %v2022_v62 = vld [vmem:[#allocation2 + $0x118] sm:$0xff]  ;;  %v3376_v50 = vpack.c.bf16 %v1998_v46, %v1997_v45 }
 0x189   :  { %2572 = vmatmul.mubr.msk.f32.vlgmr.msra.gmra.mrb[4].mxu0 %vm66_vm1, %v234_v59  ;;  %2574 = vmatpush1.msk.msra.mxu1 %vm70_vm0, %v638_v60  ;;  %v3328_v60 = vpack.c.bf16 %v1990_v58, %v1989_v57  ;;  %v2030_v53 = vld [vmem:[#allocation2 + $0x158] sm:$0xff]  ;;  %v2016_v57 = vld [vmem:[#allocation2 + $0xe8] sm:$0xff] }
 0x18a   :  { %2576 = vmatprep.subr.msk.mxu0 %vm70_vm0, %v833_v63  ;;  %v827_v2 = vpop.permute.xlu1 %826  ;;  %2575 = vmatmul.mubr.msk.f32.vlgmr.msra.gmra.mrb[8].mxu1 %vm66_vm1, %v234_v59  ;;  %v829_v3 = vpop.permute.xlu0 %828  ;;  %v3326_v59 = vpack.c.bf16 %v2038_v56, %v2037_v54  ;;  %v3331_v63 = vpack.c.bf16 %v2022_v62, %v2021_v61  ;;  %v3379_v54 = vpack.c.bf16 %v2030_v53, %v2029_v52  ;;  %v2015_v56 = vld [vmem:[#allocation2 + $0xe0] sm:$0xff]  ;;  %v2048_v62 = vld [vmem:[#allocation2 + $0x1e8] sm:$0xff] }
 0x18b   :  { %v832_v6 = vsel %vm830_vm5, %v825_v33, %v827_v2  ;;  %v831_v7 = vsel %vm830_vm5, %v827_v2, %v829_v3  ;;  %v834_v8 = vsel %vm830_vm5, %v829_v3, %v3152_v30  ;;  %914 = vmatprep.mubr.f32.mxu0 %v2983_v0  ;;  %985 = vmatprep.mubr.f32.mxu1 %v2983_v0  ;;  %v2008_v2 = vld [vmem:[#allocation2 + $0xa8] sm:$0xff]  ;;  %v2039_v3 = vld [vmem:[#allocation2 + $0x1a0] sm:$0xff] }
 0x18c   :  { %2577 = vmatpush1.msk.msra.mxu0 %vm70_vm0, %v834_v8  ;;  %2579 = vmatprep.subr.msk.mxu1 %vm70_vm0, %v831_v7  ;;  %v2040_v7 = vld [vmem:[#allocation2 + $0x1a8] sm:$0xff]  ;;  %v1991_v8 = vld [vmem:[#allocation2 + $0x20] sm:$0xff]  ;;  %v3384_v58 = vpack.c.bf16 %v2016_v57, %v2015_v56 }
 0x18d   :  { %2578 = vmatmul.mubr.msk.f32.vlgmr.msra.gmra.mrb[6].mxu0 %vm66_vm1, %v835_v1  ;;  %2580 = vmatpush1.msk.msra.mxu1 %vm70_vm0, %v832_v6  ;;  %v2047_v61 = vld [vmem:[#allocation2 + $0x1e0] sm:$0xff] }
 0x18e   :  { %2582 = vmatprep.subr.msk.mxu0 %vm70_vm0, %v3101_v16  ;;  %v3236_v9 = vpop.permute.xlu1 %1779  ;;  %2581 = vmatmul.mubr.msk.f32.vlgmr.msra.gmra.mrb[10].mxu1 %vm66_vm1, %v835_v1  ;;  %v3239_v10 = vpop.permute.xlu0 %1781  ;;  %v2007_v1 = vld [vmem:[#allocation2 + $0xa0] sm:$0xff]  ;;  %3578 = vst [vmem:[#allocation8_spill] sm:$0xff] %v3384_v58 }
 0x18f   :  { %2583 = vmatpush1.msk.msra.mxu0 %vm70_vm0, %v3097_v12  ;;  %2585 = vmatprep.subr.msk.mxu1 %vm70_vm0, %v3117_v20  ;;  %v1790_v40 = vsel %vm1787_vm9, %v3236_v9, %v3239_v10  ;;  %v3336_v6 = vpack.c.bf16 %v2008_v2, %v2007_v1  ;;  %v3386_v1 = vpack.c.bf16 %v2048_v62, %v2047_v61  ;;  %v1999_v2 = vld [vmem:[#allocation2 + $0x60] sm:$0xff] }
 0x190   :  { %2586 = vmatpush1.msk.msra.mxu1 %vm70_vm0, %v3115_v19  ;;  %1095 = vmatprep.mubr.f32.mxu0 %v2983_v0 }
 0x191   :  { %2584 = vmatmul.mubr.msk.f32.vlgmr.msra.gmra.mrb[8].mxu0 %vm66_vm1, %v235_v11  ;;  %1166 = vmatprep.mubr.f32.mxu1 %v2983_v0  ;;  %3579 = vst [vmem:[#allocation9_spill] sm:$0xff] %v3386_v1 }
 0x192   :  { %v1202_v14 = vpop.permute.xlu1 %1201  ;;  %2587 = vmatmul.mubr.msk.f32.vlgmr.msra.gmra.mrb[12].mxu1 %vm66_vm1, %v235_v11  ;;  %v1204_v15 = vpop.permute.xlu0 %1203  ;;  %1289 = vmatprep.mubr.f32.mxu0 %v2983_v0 }
 0x193   :  { %v1207_v12 = vsel %vm1205_vm6, %v3158_v36, %v1202_v14  ;;  %v1206_v16 = vsel %vm1205_vm6, %v1202_v14, %v1204_v15  ;;  %v1209_v17 = vsel %vm1205_vm6, %v1204_v15, %v3154_v32  ;;  %1360 = vmatprep.mubr.f32.mxu1 %v2983_v0  ;;  %v1596_v32 = vsel %vm1593_vm8, %v3163_v38, %v3168_v41  ;;  %v2024_v14 = vld [vmem:[#allocation2 + $0x128] sm:$0xff] }
 0x194   :  { %2588 = vmatprep.subr.msk.mxu0 %vm70_vm0, %v1207_v12  ;;  %2591 = vmatprep.subr.msk.mxu1 %vm70_vm0, %v1209_v17  ;;  %v2009_v12 = vld [vmem:[#allocation2 + $0xb0] sm:$0xff] }
 0x195   :  { %2589 = vmatpush1.msk.msra.mxu0 %vm70_vm0, %v1208_v18  ;;  %2592 = vmatpush1.msk.msra.mxu1 %vm70_vm0, %v1206_v16  ;;  %v2010_v16 = vld [vmem:[#allocation2 + $0xb8] sm:$0xff]  ;;  %v2041_v17 = vld [vmem:[#allocation2 + $0x1b0] sm:$0xff] }
 0x196   :  { %v1396_v19 = vpop.permute.xlu1 %1395  ;;  %2590 = vmatmul.mubr.msk.f32.vlgmr.msra.gmra.mrb[10].mxu0 %vm66_vm1, %v1210_v13  ;;  %2593 = vmatmul.mubr.msk.f32.vlgmr.msra.gmra.mrb[14].mxu1 %vm66_vm1, %v1210_v13  ;;  %v1398_v20 = vpop.permute.xlu0 %1397  ;;  %v2023_v13 = vld [vmem:[#allocation2 + $0x120] sm:$0xff]  ;;  %v3348_v18 = vpack.c.bf16 %v2010_v16, %v2009_v12  ;;  %v2018_v12 = vld [vmem:[#allocation2 + $0xf8] sm:$0xff]  ;;  %v2049_v16 = vld [vmem:[#allocation2 + $0x1f0] sm:$0xff] }
 0x197   :  { %v1401_v21 = vsel %vm1399_vm7, %v3165_v39, %v1396_v19  ;;  %v1400_v22 = vsel %vm1399_vm7, %v1396_v19, %v1398_v20  ;;  %v1403_v23 = vsel %vm1399_vm7, %v1398_v20, %v3156_v35  ;;  %1483 = vmatprep.mubr.f32.mxu0 %v2983_v0  ;;  %1554 = vmatprep.mubr.f32.mxu1 %v2983_v0  ;;  %v2042_v19 = vld [vmem:[#allocation2 + $0x1b8] sm:$0xff]  ;;  %v1993_v20 = vld [vmem:[#allocation2 + $0x30] sm:$0xff] }
 0x198   :  { %2594 = vmatprep.subr.msk.mxu0 %vm70_vm0, %v1401_v21  ;;  %2597 = vmatprep.subr.msk.mxu1 %vm70_vm0, %v1403_v23  ;;  %v3343_v15 = vpack.c.bf16 %v2024_v14, %v2023_v13  ;;  %v1994_v21 = vld [vmem:[#allocation2 + $0x38] sm:$0xff]  ;;  %v2017_v14 = vld [vmem:[#allocation2 + $0xf0] sm:$0xff] }
 0x199   :  { %2595 = vmatpush1.msk.msra.mxu0 %vm70_vm0, %v1402_v25  ;;  %2598 = vmatpush1.msk.msra.mxu1 %vm70_vm0, %v1400_v22  ;;  %v3350_v22 = vpack.c.bf16 %v2042_v19, %v2041_v17  ;;  %v3352_v23 = vpack.c.bf16 %v1994_v21, %v1993_v20  ;;  %v2026_v25 = vld [vmem:[#allocation2 + $0x138] sm:$0xff]  ;;  %v3394_v17 = vpack.c.bf16 %v2018_v12, %v2017_v14  ;;  %v2001_v20 = vld [vmem:[#allocation2 + $0x70] sm:$0xff] }
 0x19a   :  { %v1590_v26 = vpop.permute.xlu1 %1589  ;;  %2596 = vmatmul.mubr.msk.f32.vlgmr.msra.gmra.mrb[12].mxu0 %vm66_vm1, %v236_v24  ;;  %2599 = vmatmul.mubr.msk.f32.vlgmr.msra.gmra.mrb[16].mxu1 %vm66_vm1, %v236_v24  ;;  %v1592_v28 = vpop.permute.xlu0 %1591  ;;  %v2025_v24 = vld [vmem:[#allocation2 + $0x130] sm:$0xff]  ;;  %v2050_v19 = vld [vmem:[#allocation2 + $0x1f8] sm:$0xff] }
 0x19b   :  { %v1595_v29 = vsel %vm1593_vm8, %v3168_v41, %v1590_v26  ;;  %v1594_v30 = vsel %vm1593_vm8, %v1590_v26, %v1592_v28  ;;  %v1597_v31 = vsel %vm1593_vm8, %v1592_v28, %v3163_v38  ;;  %1677 = vmatprep.mubr.f32.mxu0 %v2983_v0  ;;  %1748 = vmatprep.mubr.f32.mxu1 %v2983_v0  ;;  %v2004_v41 = vld [vmem:[#allocation2 + $0x88] sm:$0xff]  ;;  %v2002_v21 = vld [vmem:[#allocation2 + $0x78] sm:$0xff] }
 0x19c   :  { %2600 = vmatprep.subr.msk.mxu0 %vm70_vm0, %v1595_v29  ;;  %2603 = vmatprep.subr.msk.mxu1 %vm70_vm0, %v1597_v31  ;;  %v3355_v26 = vpack.c.bf16 %v2026_v25, %v2025_v24  ;;  %v2012_v28 = vld [vmem:[#allocation2 + $0xc8] sm:$0xff]  ;;  %v2043_v29 = vld [vmem:[#allocation2 + $0x1c0] sm:$0xff]  ;;  %3582 = vst [vmem:[#allocation12_spill] sm:$0xff] %v3394_v17  ;;  %v3398_v24 = vpack.c.bf16 %v2050_v19, %v2049_v16 }
 0x19d   :  { %2601 = vmatpush1.msk.msra.mxu0 %vm70_vm0, %v1596_v32  ;;  %2604 = vmatpush1.msk.msra.mxu1 %vm70_vm0, %v1594_v30  ;;  %v2044_v31 = vld [vmem:[#allocation2 + $0x1c8] sm:$0xff]  ;;  %v1995_v32 = vld [vmem:[#allocation2 + $0x40] sm:$0xff]  ;;  %v3400_v25 = vpack.c.bf16 %v2002_v21, %v2001_v20 }
 0x19e   :  { %v1784_v33 = vpop.permute.xlu1 %1783  ;;  %2602 = vmatmul.mubr.msk.f32.vlgmr.msra.gmra.mrb[14].mxu0 %vm66_vm1, %v1598_v27  ;;  %2605 = vmatmul.mubr.msk.f32.vlgmr.msra.gmra.mrb[18].mxu1 %vm66_vm1, %v1598_v27  ;;  %v1786_v35 = vpop.permute.xlu0 %1785  ;;  %v2011_v27 = vld [vmem:[#allocation2 + $0xc0] sm:$0xff]  ;;  %3583 = vst [vmem:[#allocation13_spill] sm:$0xff] %v3398_v24 }
 0x19f   :  { %v1789_v36 = vsel %vm1787_vm9, %v3239_v10, %v1784_v33  ;;  %v1788_v39 = vsel %vm1787_vm9, %v1784_v33, %v1786_v35  ;;  %v1791_v38 = vsel %vm1787_vm9, %v1786_v35, %v3236_v9  ;;  %1871 = vmatprep.mubr.f32.mxu0 %v2983_v0  ;;  %1942 = vmatprep.mubr.f32.mxu1 %v2983_v0  ;;  %v2003_v0 = vld [vmem:[#allocation2 + $0x80] sm:$0xff]  ;;  %v1992_v9 = vld [vmem:[#allocation2 + $0x28] sm:$0xff] }
 0x1a0   :  { %2606 = vmatprep.subr.msk.mxu0 %vm70_vm0, %v1789_v36  ;;  %2609 = vmatprep.subr.msk.mxu1 %vm70_vm0, %v1791_v38  ;;  %v3312_v43 = vpack.c.bf16 %v2004_v41, %v2003_v0  ;;  %v3338_v10 = vpack.c.bf16 %v2040_v7, %v2039_v3  ;;  %v3340_v11 = vpack.c.bf16 %v1992_v9, %v1991_v8  ;;  %v1996_v33 = vld [vmem:[#allocation2 + $0x48] sm:$0xff]  ;;  %v2014_v0 = vld [vmem:[#allocation2 + $0xd8] sm:$0xff]  ;;  %v2045_v41 = vld [vmem:[#allocation2 + $0x1d0] sm:$0xff] }
 0x1a1   :  { %2607 = vmatpush1.msk.msra.mxu0 %vm70_vm0, %v1790_v40  ;;  %2610 = vmatpush1.msk.msra.mxu1 %vm70_vm0, %v1788_v39  ;;  %v3360_v30 = vpack.c.bf16 %v2012_v28, %v2011_v27  ;;  %v3362_v35 = vpack.c.bf16 %v2044_v31, %v2043_v29  ;;  %v3364_v36 = vpack.c.bf16 %v1996_v33, %v1995_v32  ;;  %v2027_v39 = vld [vmem:[#allocation2 + $0x140] sm:$0xff]  ;;  %v2028_v38 = vld [vmem:[#allocation2 + $0x148] sm:$0xff]  ;;  %v2013_v40 = vld [vmem:[#allocation2 + $0xd0] sm:$0xff]  ;;  %v3411_v31 = vshrl.u32 %v246_v34, 7 }
 0x1a2   :  { %2608 = vmatmul.mubr.msk.f32.vlgmr.msra.gmra.mrb[16].mxu0 %vm66_vm1, %v237_v37  ;;  %2611 = vmatmul.mubr.msk.f32.vlgmr.msra.gmra.mrb[20].mxu1 %vm66_vm1, %v237_v37  ;;  %v3367_v37 = vpack.c.bf16 %v2028_v38, %v2027_v39  ;;  %v3372_v42 = vpack.c.bf16 %v2014_v0, %v2013_v40  ;;  %v3374_v49 = vpack.c.bf16 %v2046_v44, %v2045_v41  ;;  %v2000_v3 = vld [vmem:[#allocation2 + $0x68] sm:$0xff]  ;;  %v2031_v7 = vld [vmem:[#allocation2 + $0x160] sm:$0xff]  ;;  %v2033_v27 = vld [vmem:[#allocation2 + $0x170] sm:$0xff] }
 0x1a3   :  { %2779 = vmatprep.subr.bf16.mxu0 %v3312_v43  ;;  %2811 = vmatprep.subr.bf16.mxu1 %v3314_v47  ;;  %v2032_v8 = vld [vmem:[#allocation2 + $0x168] sm:$0xff]  ;;  %v3390_v9 = vpack.c.bf16 %v2000_v3, %v1999_v2  ;;  %3584 = vst [vmem:[#allocation14_spill] sm:$0xff] %v3400_v25  ;;  %v2034_v28 = vld [vmem:[#allocation2 + $0x178] sm:$0xff]  ;;  %v412_v32 = vsub.s32 0, %v3411_v31  ;;  %v606_v33 = vsub.s32 1, %v3411_v31  ;;  %v3418_v39 = vld [vmem:[%s3563_s5] sm:$0xff] }
 0x1a4   :  { %2781 = vmatpush3.bf16.msra.mxu0 %v3316_v48  ;;  %2813 = vmatpush3.bf16.msra.mxu1 %v3319_v51  ;;  %v3392_v13 = vpack.c.bf16 %v2032_v8, %v2031_v7  ;;  %v3403_v29 = vpack.c.bf16 %v2034_v28, %v2033_v27  ;;  %v3423_v38 = vld [vmem:[%s3563_s5 + $0x8] sm:$0xff]  ;;  %v800_v40 = vsub.s32 2, %v3411_v31  ;;  %v994_v20 = vsub.s32 3, %v3411_v31 }
 0x1a5   :  { %2783 = vmatprep.subr.bf16.mxu0 %v3324_v55  ;;  %2815 = vmatprep.subr.bf16.mxu1 %v3326_v59  ;;  %3580 = vst [vmem:[#allocation10_spill] sm:$0xff] %v3390_v9  ;;  %v413_v0 = vrot.slane %v3418_v39, %v412_v32  ;;  %v607_v45 = vrot.slane %v3418_v39, %v606_v33 }
 0x1a6   :  { %3581 = vst [vmem:[#allocation11_spill] sm:$0xff] %v3392_v13  ;;  %3585 = vst [vmem:[#allocation15_spill] sm:$0xff] %v3403_v29  ;;  %v417_v46 = vrot.slane %v3423_v38, %v412_v32  ;;  %v611_v56 = vrot.slane %v3423_v38, %v606_v33  ;;  %v801_v3 = vrot.slane %v3418_v39, %v800_v40 }
 0x1a7   :  { %v805_v7 = vrot.slane %v3423_v38, %v800_v40 }
 0x1a8   :  { %2785 = vmatpush3.bf16.msra.mxu0 %v3328_v60  ;;  %2817 = vmatpush3.bf16.msra.mxu1 %v3331_v63 }
 0x1a9   :  { %2787 = vmatprep.subr.bf16.mxu0 %v3336_v6  ;;  %2819 = vmatprep.subr.bf16.mxu1 %v3338_v10 }
 0x1ac   :  { %2789 = vmatpush3.bf16.msra.mxu0 %v3340_v11  ;;  %2821 = vmatpush3.bf16.msra.mxu1 %v3343_v15 }
 0x1ad   :  { %2791 = vmatprep.subr.bf16.mxu0 %v3348_v18  ;;  %2823 = vmatprep.subr.bf16.mxu1 %v3350_v22 }
 0x1b0   :  { %2793 = vmatpush3.bf16.msra.mxu0 %v3352_v23  ;;  %2825 = vmatpush3.bf16.msra.mxu1 %v3355_v26 }
 0x1b1   :  { %2795 = vmatprep.subr.bf16.mxu0 %v3360_v30  ;;  %2827 = vmatprep.subr.bf16.mxu1 %v3362_v35 }
 0x1b4   :  { %2797 = vmatpush3.bf16.msra.mxu0 %v3364_v36  ;;  %2829 = vmatpush3.bf16.msra.mxu1 %v3367_v37 }
 0x1b5   :  { %2799 = vmatprep.subr.bf16.mxu0 %v3372_v42  ;;  %2831 = vmatprep.subr.bf16.mxu1 %v3374_v49 }
 0x1b8   :  { %2801 = vmatpush3.bf16.msra.mxu0 %v3376_v50  ;;  %2833 = vmatpush3.bf16.msra.mxu1 %v3379_v54 }
 0x1b9   :  { %2803 = vmatprep.subr.bf16.mxu0 %v3384_v58  ;;  %2835 = vmatprep.subr.bf16.mxu1 %v3386_v1  ;;  %v995_v58 = vrot.slane %v3418_v39, %v994_v20 }
 0x1bc   :  { %2805 = vmatpush3.bf16.msra.mxu0 %v3390_v9  ;;  %2837 = vmatpush3.bf16.msra.mxu1 %v3392_v13 }
 0x1bd   :  { %2807 = vmatprep.subr.bf16.mxu0 %v3394_v17  ;;  %2839 = vmatprep.subr.bf16.mxu1 %v3398_v24 }
 0x1c0   :  { %2809 = vmatpush3.bf16.msra.mxu0 %v3400_v25  ;;  %2841 = vmatpush3.bf16.msra.mxu1 %v3403_v29 }
 0x1c1   :  { %2843 = vmatprep.subr.bf16.mxu0 %v3312_v43  ;;  %2875 = vmatprep.subr.bf16.mxu1 %v3314_v47  ;;  %v3428_v43 = vld [vmem:[%s3563_s5 + $0x10] sm:$0xff]  ;;  %v3433_v47 = vld [vmem:[%s3563_s5 + $0x18] sm:$0xff] }
 0x1c2   :  { %v421_v52 = vrot.slane %v3428_v43, %v412_v32  ;;  %v615_v57 = vrot.slane %v3428_v43, %v606_v33  ;;  %v425_v61 = vrot.slane %v3433_v47, %v412_v32  ;;  %v619_v62 = vrot.slane %v3433_v47, %v606_v33 }
 0x1c3   :  { %v809_v19 = vrot.slane %v3428_v43, %v800_v40  ;;  %v813_v17 = vrot.slane %v3433_v47, %v800_v40 }
 0x254   :  { %v334_v34 = vpop.f32.mrb[0].mxu0 }
 0x255   :  { %v336_v41 = vpop.f32.mrb[1].mxu0  ;;  %v405_v44 = vpop.f32.mrb[4].mxu1  ;;  %v426_v8 = vmul.f32 %v413_v0, %v334_v34 }
 0x256   :  { %v407_v53 = vpop.f32.mrb[5].mxu1  ;;  %v427_v21 = vmul.f32 %v417_v46, %v336_v41  ;;  %v428_v27 = vmul.f32 %v421_v52, %v405_v44  ;;  %v1175_v41 = vsub.s32 4, %v3411_v31 }
 0x257   :  { %v429_v25 = vmul.f32 %v425_v61, %v407_v53  ;;  %v999_v53 = vrot.slane %v3423_v38, %v994_v20 }
 0x258   :  { %v528_v2 = vpop.f32.mrb[2].mxu0 }
 0x259   :  { %v620_v14 = vmul.f32 %v607_v45, %v528_v2  ;;  %v530_v12 = vpop.f32.mrb[3].mxu0  ;;  %v599_v16 = vpop.f32.mrb[6].mxu1 }
 0x25a   :  { %v621_v28 = vmul.f32 %v611_v56, %v530_v12  ;;  %v622_v29 = vmul.f32 %v615_v57, %v599_v16  ;;  %v601_v32 = vpop.f32.mrb[7].mxu1  ;;  %v1003_v56 = vrot.slane %v3428_v43, %v994_v20  ;;  %v1176_v12 = vrot.slane %v3418_v39, %v1175_v41 }
 0x25b   :  { %v624_v33 = vadd.f32 %v620_v14, %v426_v8  ;;  %v623_v24 = vmul.f32 %v619_v62, %v601_v32 }
 0x25c   :  { %v625_v13 = vadd.f32 %v621_v28, %v427_v21  ;;  %v626_v9 = vadd.f32 %v622_v29, %v428_v27  ;;  %v722_v34 = vpop.f32.mrb[4].mxu0  ;;  %v1007_v29 = vrot.slane %v3433_v47, %v994_v20  ;;  %v1184_v21 = vrot.slane %v3428_v43, %v1175_v41 }
 0x25d   :  { %v627_v0 = vadd.f32 %v623_v24, %v429_v25  ;;  %v814_v45 = vmul.f32 %v801_v3, %v722_v34  ;;  %v724_v2 = vpop.f32.mrb[5].mxu0  ;;  %v793_v1 = vpop.f32.mrb[8].mxu1 }
 0x25e   :  { %v815_v44 = vmul.f32 %v805_v7, %v724_v2  ;;  %v816_v46 = vmul.f32 %v809_v19, %v793_v1  ;;  %v795_v52 = vpop.f32.mrb[9].mxu1  ;;  %v1180_v1 = vrot.slane %v3423_v38, %v1175_v41 }
 0x25f   :  { %v818_v57 = vadd.f32 %v814_v45, %v624_v33  ;;  %v817_v40 = vmul.f32 %v813_v17, %v795_v52  ;;  %v1369_v17 = vsub.s32 5, %v3411_v31  ;;  %v1563_v45 = vsub.s32 6, %v3411_v31 }
 0x260   :  { %v819_v61 = vadd.f32 %v815_v44, %v625_v13  ;;  %v820_v24 = vadd.f32 %v816_v46, %v626_v9  ;;  %v916_v25 = vpop.f32.mrb[6].mxu0  ;;  %v1188_v9 = vrot.slane %v3433_v47, %v1175_v41 }
 0x261   :  { %v821_v62 = vadd.f32 %v817_v40, %v627_v0  ;;  %v1008_v3 = vmul.f32 %v995_v58, %v916_v25  ;;  %v918_v8 = vpop.f32.mrb[7].mxu0  ;;  %v987_v14 = vpop.f32.mrb[10].mxu1  ;;  %v1370_v52 = vrot.slane %v3418_v39, %v1369_v17  ;;  %v1374_v41 = vrot.slane %v3423_v38, %v1369_v17 }
 0x262   :  { %v1009_v7 = vmul.f32 %v999_v53, %v918_v8  ;;  %v1010_v16 = vmul.f32 %v1003_v56, %v987_v14  ;;  %v989_v19 = vpop.f32.mrb[11].mxu1  ;;  %v1378_v53 = vrot.slane %v3428_v43, %v1369_v17  ;;  %v1382_v40 = vrot.slane %v3433_v47, %v1369_v17 }
 0x263   :  { %v1012_v27 = vadd.f32 %v1008_v3, %v818_v57  ;;  %v1011_v20 = vmul.f32 %v1007_v29, %v989_v19  ;;  %v1564_v3 = vrot.slane %v3418_v39, %v1563_v45  ;;  %v1576_v17 = vrot.slane %v3433_v47, %v1563_v45 }
 0x264   :  { %v1013_v13 = vadd.f32 %v1009_v7, %v819_v61  ;;  %v1014_v28 = vadd.f32 %v1010_v16, %v820_v24  ;;  %v1097_v58 = vpop.f32.mrb[8].mxu0  ;;  %v1572_v7 = vrot.slane %v3428_v43, %v1563_v45  ;;  %v1757_v16 = vsub.s32 7, %v3411_v31 }
 0x265   :  { %v1015_v32 = vadd.f32 %v1011_v20, %v821_v62  ;;  %v1189_v33 = vmul.f32 %v1176_v12, %v1097_v58  ;;  %v1099_v34 = vpop.f32.mrb[9].mxu0  ;;  %v1168_v0 = vpop.f32.mrb[12].mxu1 }
 0x266   :  { %v1190_v2 = vmul.f32 %v1180_v1, %v1099_v34  ;;  %v1191_v44 = vmul.f32 %v1184_v21, %v1168_v0  ;;  %v1170_v46 = vpop.f32.mrb[13].mxu1  ;;  %v1766_v31 = vrot.slane %v3428_v43, %v1757_v16  ;;  %v2612_v43 = vld [vmem:[%s3563_s5 + $0x20] ss:$0 sm:$0xff] }
 0x267   :  { %v1193_v56 = vadd.f32 %v1189_v33, %v1012_v27  ;;  %v1192_v57 = vmul.f32 %v1188_v9, %v1170_v46  ;;  %v1568_v27 = vrot.slane %v3423_v38, %v1563_v45  ;;  %v1770_v45 = vrot.slane %v3433_v47, %v1757_v16 }
 0x268   :  { %v1194_v29 = vadd.f32 %v1190_v2, %v1013_v13  ;;  %v1195_v61 = vadd.f32 %v1191_v44, %v1014_v28  ;;  %v1758_v44 = vrot.slane %v3418_v39, %v1757_v16 }
 0x269   :  { %v1196_v24 = vadd.f32 %v1192_v57, %v1015_v32  ;;  %v1291_v25 = vpop.f32.mrb[10].mxu0  ;;  %v1362_v62 = vpop.f32.mrb[14].mxu1 }
 0x26a   :  { %v1383_v8 = vmul.f32 %v1370_v52, %v1291_v25  ;;  %v1385_v14 = vmul.f32 %v1378_v53, %v1362_v62  ;;  %v1293_v12 = vpop.f32.mrb[11].mxu0  ;;  %v1364_v1 = vpop.f32.mrb[15].mxu1  ;;  %v1762_v53 = vrot.slane %v3423_v38, %v1757_v16  ;;  %v2614_v38 = vld [vmem:[%s3563_s5 + $0x30] ss:$0 sm:$0xff] }
 0x26b   :  { %v1384_v19 = vmul.f32 %v1374_v41, %v1293_v12  ;;  %v1386_v21 = vmul.f32 %v1382_v40, %v1364_v1  ;;  %v2613_v12 = vld [vmem:[%s3563_s5 + $0x28] ss:$0 sm:$0xff]  ;;  %v2615_v1 = vld [vmem:[%s3563_s5 + $0x38] ss:$0 sm:$0xff] }
 0x26c   :  { %v1387_v20 = vadd.f32 %v1383_v8, %v1193_v56  ;;  %v1389_v9 = vadd.f32 %v1385_v14, %v1195_v61 }
 0x26d   :  { %v1388_v13 = vadd.f32 %v1384_v19, %v1194_v29  ;;  %v1390_v28 = vadd.f32 %v1386_v21, %v1196_v24  ;;  %v1485_v58 = vpop.f32.mrb[12].mxu0  ;;  %v1556_v32 = vpop.f32.mrb[16].mxu1 }
 0x26e   :  { %v1577_v33 = vmul.f32 %v1564_v3, %v1485_v58  ;;  %v1579_v34 = vmul.f32 %v1572_v7, %v1556_v32  ;;  %v1487_v0 = vpop.f32.mrb[13].mxu0  ;;  %v1558_v2 = vpop.f32.mrb[17].mxu1 }
 0x26f   :  { %v1578_v46 = vmul.f32 %v1568_v27, %v1487_v0  ;;  %v1580_v52 = vmul.f32 %v1576_v17, %v1558_v2 }
 0x270   :  { %v1581_v56 = vadd.f32 %v1577_v33, %v1387_v20  ;;  %v1583_v57 = vadd.f32 %v1579_v34, %v1389_v9  ;;  %v1977_v33 = vpop.permute.xlu1 %1976 }
 0x271   :  { %v1582_v41 = vadd.f32 %v1578_v46, %v1388_v13  ;;  %v1584_v40 = vadd.f32 %v1580_v52, %v1390_v28  ;;  %v1679_v29 = vpop.f32.mrb[14].mxu0  ;;  %v1750_v61 = vpop.f32.mrb[18].mxu1 }
 0x272   :  { %v1771_v24 = vmul.f32 %v1758_v44, %v1679_v29  ;;  %v1773_v25 = vmul.f32 %v1766_v31, %v1750_v61  ;;  %v1681_v62 = vpop.f32.mrb[15].mxu0  ;;  %v1752_v3 = vpop.f32.mrb[19].mxu1  ;;  %v2432_v29 = vld [vmem:[%s3564_s6 + $0x8] sm:$0xff] }
 0x273   :  { %v1772_v8 = vmul.f32 %v1762_v53, %v1681_v62  ;;  %v1774_v39 = vmul.f32 %v1770_v45, %v1752_v3 }
 0x274   :  { %v1775_v47 = vadd.f32 %v1771_v24, %v1581_v56  ;;  %v1777_v14 = vadd.f32 %v1773_v25, %v1583_v57  ;;  %v2345_v61 = vpop.permute.xlu1 %2344  ;;  %v2340_v24 = vpop.permute.xlu0 %2339 }
 0x275   :  { %v1776_v7 = vadd.f32 %v1772_v8, %v1582_v41  ;;  %v1778_v16 = vadd.f32 %v1774_v39, %v1584_v40  ;;  %v1873_v19 = vpop.f32.mrb[16].mxu0  ;;  %v1944_v21 = vpop.f32.mrb[20].mxu1  ;;  %v2334_v41 = vld [vmem:[%s3567_s9 + $0x8] sm:$0xff]  ;;  %v2431_v40 = vld [vmem:[%s3564_s6] sm:$0xff] }
 0x276   :  { %v1965_v27 = vmul.f32 %v2612_v43, %v1873_v19  ;;  %v1967_v17 = vmul.f32 %v2614_v38, %v1944_v21  ;;  %v1875_v20 = vpop.f32.mrb[17].mxu0  ;;  %v1946_v9 = vpop.f32.mrb[21].mxu1 }
 0x277   :  { %v1966_v13 = vmul.f32 %v2613_v12, %v1875_v20  ;;  %v1968_v28 = vmul.f32 %v2615_v1, %v1946_v9 }
 0x278   :  { %v1969_v58 = vadd.f32 %v1965_v27, %v1775_v47  ;;  %v1971_v32 = vadd.f32 %v1967_v17, %v1777_v14  ;;  %v2443_v25 = vpop.permute.xlu1 %2442  ;;  %v2438_v62 = vpop.permute.xlu0 %2437 }
 0x279   :  { %v1970_v34 = vadd.f32 %v1966_v13, %v1776_v7  ;;  %v1972_v0 = vadd.f32 %v1968_v28, %v1778_v16  ;;  %v2906_v3 = vadd.f32 %v2443_v25, %v2345_v61  ;;  %v2908_v8 = vadd.f32 %v2438_v62, %v2340_v24 }
 0x27a   :  { %v1979_v2 = vadd.f32 %v1977_v33, %v1969_v58  ;;  %v1981_v44 = vadd.f32 %v1977_v33, %v1971_v32 }
 0x27b   :  { %v1980_v31 = vadd.f32 %v1977_v33, %v1970_v34  ;;  %v1982_v46 = vadd.f32 %v1977_v33, %v1972_v0 }
 0x27c   :  { %v1983_v45 = vmax.f32 %v1979_v2, 0.0  ;;  %v1985_v56 = vmax.f32 %v1981_v44, 0.0 }
 0x27d   :  { %v1984_v52 = vmax.f32 %v1980_v31, 0.0  ;;  %v1986_v53 = vmax.f32 %v1982_v46, 0.0 }
 0x27f   :  { %2115 = vmatprep.mubr.f32.mxu0 %v1984_v52  ;;  %2185 = vmatprep.mubr.f32.mxu1 %v1986_v53 }
 0x280   :  { %2116 = vmatmul.mubr.f32.vlgmr.msra.gmra.mrb[18].mxu0 %v1983_v45  ;;  %2186 = vmatmul.mubr.f32.vlgmr.msra.gmra.mrb[22].mxu1 %v1985_v56 }
 0x281   :  { %2845 = vmatpush3.bf16.msra.mxu0 %v3316_v48  ;;  %2877 = vmatpush3.bf16.msra.mxu1 %v3319_v51  ;;  %v3588_v48 = vld [vmem:[#allocation10_spill] sm:$0xff]  ;;  %v3589_v51 = vld [vmem:[#allocation11_spill] sm:$0xff] }
 0x282   :  { %2847 = vmatprep.subr.bf16.mxu0 %v3324_v55  ;;  %2879 = vmatprep.subr.bf16.mxu1 %v3326_v59  ;;  %v3590_v55 = vld [vmem:[#allocation12_spill] sm:$0xff]  ;;  %v3591_v59 = vld [vmem:[#allocation13_spill] sm:$0xff] }
 0x283   :  { %2257 = vmatprep.mubr.f32.mxu0 %v3077_v4  ;;  %2327 = vmatprep.mubr.f32.mxu1 %v3079_v5  ;;  %v3586_v4 = vld [vmem:[#allocation8_spill] sm:$0xff]  ;;  %v3587_v5 = vld [vmem:[#allocation9_spill] sm:$0xff] }
 0x285   :  { %2849 = vmatpush3.bf16.msra.mxu0 %v3328_v60  ;;  %2881 = vmatpush3.bf16.msra.mxu1 %v3331_v63  ;;  %v3592_v60 = vld [vmem:[#allocation14_spill] sm:$0xff]  ;;  %v3593_v63 = vld [vmem:[#allocation15_spill] sm:$0xff] }
 0x286   :  { %2851 = vmatprep.subr.bf16.mxu0 %v3336_v6  ;;  %2883 = vmatprep.subr.bf16.mxu1 %v3338_v10  ;;  %v2930_v6 = vld [vmem:[%s3558_s0] sm:$0xff]  ;;  %v2931_v10 = vld [vmem:[%s3558_s0 + $0x8] sm:$0xff] }
 0x289   :  { %2853 = vmatpush3.bf16.msra.mxu0 %v3340_v11  ;;  %2885 = vmatpush3.bf16.msra.mxu1 %v3343_v15  ;;  %v2333_v11 = vld [vmem:[%s3567_s9] sm:$0xff]  ;;  %s2993_s9 = smov [#allocation5]  }
 0x28a   :  { %2855 = vmatprep.subr.bf16.mxu0 %v3348_v18  ;;  %2887 = vmatprep.subr.bf16.mxu1 %v3350_v22  ;;  %s2540_s23 = sshll.u32 %s2993_s9, 4  ;;  %s2541_s23 = int_to_ptr.vmem [resolvable:$true] %s2540_s23 }
 0x28b   :  { %s2954_s6 = scalar_lea.vmem %s2541_s23, 256  ;;  %p2959_p9 = scmp.lt.s32.totalorder %s2541_s23, %s2541_s23 }
 0x28c   :  { %p2955_p8 = scmp.ne.s32.totalorder %s2541_s23, %s2954_s6  ;;  %p2960_p10 = scmp.lt.s32.totalorder %s2954_s6, %s2954_s6 }
 0x28d   :  { %2857 = vmatpush3.bf16.msra.mxu0 %v3352_v23  ;;  %2889 = vmatpush3.bf16.msra.mxu1 %v3355_v26 }
 0x28e   :  { %2859 = vmatprep.subr.bf16.mxu0 %v3360_v30  ;;  %2891 = vmatprep.subr.bf16.mxu1 %v3362_v35  ;;  %p2961_p11 = por %p2960_p10, %p2959_p9 }
 0x290   :  { %p2962_p12 = pnand %p2961_p11, %p2955_p8 }
 0x291   :  { %2861 = vmatpush3.bf16.msra.mxu0 %v3364_v36  ;;  %2893 = vmatpush3.bf16.msra.mxu1 %v3367_v37 }
 0x292   :  { %2863 = vmatprep.subr.bf16.mxu0 %v3372_v42  ;;  %2895 = vmatprep.subr.bf16.mxu1 %v3374_v49 }
 0x295   :  { %2865 = vmatpush3.bf16.msra.mxu0 %v3376_v50  ;;  %2897 = vmatpush3.bf16.msra.mxu1 %v3379_v54 }
 0x296   :  { %2867 = vmatprep.subr.bf16.mxu0 %v3586_v4  ;;  %2899 = vmatprep.subr.bf16.mxu1 %v3587_v5 }
 0x299   :  { %2869 = vmatpush3.bf16.msra.mxu0 %v3588_v48  ;;  %2901 = vmatpush3.bf16.msra.mxu1 %v3589_v51 }
 0x29a   :  { %2871 = vmatprep.subr.bf16.mxu0 %v3590_v55  ;;  %2903 = vmatprep.subr.bf16.mxu1 %v3591_v59 }
 0x29d   :  { %2873 = vmatpush3.bf16.msra.mxu0 %v3592_v60  ;;  %2905 = vmatpush3.bf16.msra.mxu1 %v3593_v63 }
 0x2a0   :  { %2258 = vmatmul.mubr.f32.vlgmr.msra.gmra.mrb[20].mxu0 %v2930_v6  ;;  %2328 = vmatmul.mubr.f32.vlgmr.msra.gmra.mrb[24].mxu1 %v2931_v10 }
 0x2a1   :  { %2770 = vmatprep.mubr.msk.f32.mxu0 %vm66_vm1, %v2333_v11 }
 0x353   :  { %v2654_v15 = vpop.f32.mrb[18].mxu0  ;;  %v2689_v18 = vpop.f32.mrb[22].mxu1 }
 0x354   :  { %v2655_v22 = vpop.f32.mrb[19].mxu0  ;;  %v2690_v23 = vpop.f32.mrb[23].mxu1 }
 0x355   :  { %v2656_v26 = vadd.f32 %v2655_v22, %v2654_v15  ;;  %v2691_v30 = vadd.f32 %v2690_v23, %v2689_v18 }
 0x357   :  { %v2188_v35 = vadd.f32 %v2691_v30, %v2656_v26 }
 0x373   :  { %v2724_v36 = vpop.f32.mrb[20].mxu0  ;;  %v2759_v37 = vpop.f32.mrb[24].mxu1 }
 0x374   :  { %v2725_v42 = vpop.f32.mrb[21].mxu0  ;;  %v2760_v49 = vpop.f32.mrb[25].mxu1 }
 0x375   :  { %v2726_v50 = vadd.f32 %v2725_v42, %v2724_v36  ;;  %v2761_v54 = vadd.f32 %v2760_v49, %v2759_v37 }
 0x377   :  { %v2330_v57 = vadd.f32 %v2761_v54, %v2726_v50 }
 0x379   :  { %2768 = vmatprep.subr.msk.mxu0 %vm70_vm0, %v2330_v57 }
 0x37a   :  { %2769 = vmatpush3.msk.msra.mxu0 %vm70_vm0, %v2330_v57 }
 0x37b   :  { %2771 = vmatmul.mubr.msk.f32.vlgmr.msra.gmra.mrb[22].mxu0 %vm66_vm1, %v2334_v41  ;;  %2773 = vmatprep.subr.msk.mxu0 %vm70_vm0, %v2188_v35 }
 0x37c   :  { %2774 = vmatpush3.msk.msra.mxu0 %vm70_vm0, %v2188_v35  ;;  %2775 = vmatprep.mubr.msk.f32.mxu0 %vm66_vm1, %v2431_v40 }
 0x383   :  { %2776 = vmatmul.mubr.msk.f32.vlgmr.msra.gmra.mrb[22].mxu0 %vm66_vm1, %v2432_v29 }
 0x456   :  { %v2777_v39 = vpop.f32.mrb[22].mxu0 }
 0x457   :  { %v2907_v43 = vadd.f32 %v2906_v3, %v2777_v39  ;;  %v2520_v38 = vpop.f32.mrb[23].mxu0 }
 0x458   :  { %v2909_v47 = vadd.f32 %v2908_v8, %v2520_v38 }
 0x459   :  { %v2532_v14 = vmax.f32 %v2907_v43, 0.0 }
 0x45a   :  { %v2531_v12 = vmax.f32 %v2909_v47, 0.0 }
 0x45b   :  { %2534 = vst [vmem:[#allocation5 + $0x8] sm:$0xff] %v2532_v14 }
 0x45c   :  { %2533 = vst [vmem:[#allocation5] sm:$0xff] %v2531_v12 }
 0x45d   :  { %2965 = shalt.err (!%p2962_p12)
}
 0x45e   :  { %s2966_s26 = scalar_lea.hbm %s3569_s11, 256 }
 0x45f   :  { %p2967_p13 = scmp.ne.s32.totalorder %s3569_s11, %s2966_s26  ;;  %p2970_p0 = scmp.lt.u32.totalorder %s2966_s26, %s3569_s11 }
 0x461   :  { %p2972_p1 = pnand %p2970_p0, %p2967_p13 }
 0x463   :  { %2975 = shalt.err (!%p2972_p1)
}
 0x464   :  { %2546 = dma.vmem_to_hbm [thread:$0]  %s2541_s23, 256, %s3569_s11, [#allocation4], %s2981_s27, %s2981_s27, %s2982_s28  }
 0x465   :  { %2978 = dma.done.wait [#allocation4], 256  }
 0x466   :  { %2979 = vsyncadd [#allocation4], 4294967040 }
 0x467   :  { %2550 = vsyncpa [#allocation3], 1 }
 0x468   :  { %2551 = vsyncpa [#allocation4], 1 }

</bundles_post_ra>
